<compile_context>
chip_gen: v6e
topology: v6e:2x2x1
jax: 0.10.0
libtpu: 0.0.40
codegen_flags: <defaults>
</compile_context>

<pallas_src>
import numpy as np
import jax
import jax.numpy as jnp
from jax.experimental import pallas as pl
from jax.experimental.pallas import tpu as pltpu


# ----------------------------- HiPPO-LegT constants (numpy "glue", matches torch module) -----------

def legt_transition(N):
    Q = np.arange(N, dtype=np.float64)
    R = (2 * Q + 1) ** 0.5
    j, i = np.meshgrid(Q, Q)
    A = R[:, None] * np.where(i < j, (-1.0) ** (i - j), 1) * R[None, :]
    B = R[:, None]
    A = -A
    return A, B


def bilinear_discretize(A, B, dt):
    N = A.shape[0]
    I = np.eye(N)
    ima = I - 0.5 * dt * A
    dA = np.linalg.solve(ima, I + 0.5 * dt * A)
    dB = np.linalg.solve(ima, dt * B).squeeze(-1)
    return dA, dB


def hippo_legt_K(N, seq_len, dt):
    A, B = legt_transition(N)
    dA, dB = bilinear_discretize(A, B, dt)
    Ks, AB = [], dB
    for _ in range(seq_len):
        AB = dA @ AB
        Ks.append(AB)
    return np.stack(Ks, axis=0).T                       # (N, seq_len)


def eval_legendre_all(N, x):
    # P_n(x) for n = 0..N-1 via three-term recurrence; x: (T,) -> (N, T)
    T = x.shape[0]
    P = np.zeros((N, T), dtype=np.float64)
    P[0] = 1.0
    if N > 1:
        P[1] = x
    for n in range(1, N - 1):
        P[n + 1] = ((2 * n + 1) * x * P[n] - n * P[n - 1]) / (n + 1)
    return P


def legt_eval_matrix(N, pred_len):
    dt = 1.0 / pred_len
    vals = np.arange(0.0, 1.0, dt)                      # (pred_len,)
    x = 2 * vals - 1
    em = eval_legendre_all(N, x).T                      # (pred_len, N)
    em = em * ((2 * np.arange(N) + 1) ** 0.5 * (-1.0) ** np.arange(N))[None, :]
    meas = np.heaviside(vals, 0.0) * np.heaviside(1.0 - vals, 0.0)
    em[meas == 0.0] = 0.0                               # truncate measure (zeroes t=0 row)
    return em                                           # (pred_len, N)


# ----------------------------- Pallas kernel -----------------------------

def film_kernel(x_ref, kdb_ref, webd_ref, o_ref):
    # x_ref:    (B, E*L*D)       input in original layout, trailing dims flattened
    # kdb_ref:  (E*L*D, E*D*N)   block-diagonal HiPPO projection operator
    # webd_ref: (E*D*N, E*C*P)   fused channel-mix + reconstruction operator (block-diag in e)
    # o_ref:    (B, E*C*P)
    xf = jnp.dot(x_ref[...], kdb_ref[...], preferred_element_type=jnp.float32)    # (B, E*D*N)
    y = jnp.dot(xf, webd_ref[...], preferred_element_type=jnp.float32)            # (B, E*C*P)
    o_ref[...] = y.astype(o_ref.dtype)                                            # single store


@jax.jit
def film_forward(x, kflipT, weights, evalT):
    """x: (B,E,L,D) f32; kflipT: (L,N); weights: (E,D,C,N); evalT: (N,P). Returns (B,E,C,P) f32."""
    B, E, L, D = x.shape
    N = kflipT.shape[1]
    C = weights.shape[2]
    P = evalT.shape[1]

    eye_e = jnp.eye(E, dtype=jnp.float32)
    eye_d = jnp.eye(D, dtype=jnp.float32)
    # Fused, parameter-only operators (pure outer products — no contractions here):
    #   KDB [(e,l,d),(e',d',n)] = kflipT[l,n] * δ(e,e') * δ(d,d')
    #   WEBD[(e',d,n),(e,c,p)]  = W[e',d,c,n] * evalT[n,p] * δ(e',e)
    kdb = jnp.einsum('ln,ef,dg->eldfgn', kflipT, eye_e, eye_d).reshape(E * L * D, E * D * N)
    webd = jnp.einsum('edcn,np,ef->ednfcp', weights, evalT, eye_e).reshape(E * D * N, E * C * P)

    x2 = x.reshape(B, E * L * D)            # trailing-dim merge: free, layout-preserving

    out = pl.pallas_call(
        film_kernel,
        out_shape=jax.ShapeDtypeStruct((B, E * C * P), jnp.float32),
        in_specs=[
            pl.BlockSpec(memory_space=pltpu.MemorySpace.VMEM),
            pl.BlockSpec(memory_space=pltpu.MemorySpace.VMEM),
            pl.BlockSpec(memory_space=pltpu.MemorySpace.VMEM),
        ],
        out_specs=pl.BlockSpec(memory_space=pltpu.MemorySpace.VMEM),
    )(x2, kdb, webd)

    return out.reshape(B, E, C, P)          # trailing-dim splits: free


# ----------------------------- main -----------------------------

if __name__ == "__main__":
    # small, Film-consistent shapes
    B, E, L, D = 2, 3, 8, 4     # batch, enc_in, seq_len, in_channels
    C = 4                       # out_channels
    N = 128                     # HiPPO order (module default)
    pred_len = 8                # dt = 1 / pred_len

    # deterministic HiPPO buffers (double precision numpy, then cast like torch register_buffer)
    K = hippo_legt_K(N, L, dt=1.0 / pred_len)                                  # (N, L)
    kflipT = jnp.asarray(np.ascontiguousarray(K[:, ::-1].T), dtype=jnp.float32)        # (L, N)
    evalT = jnp.asarray(np.ascontiguousarray(legt_eval_matrix(N, pred_len).T),
                        dtype=jnp.float32)                                     # (N, P)

    # deterministic parameters / inputs
    key = jax.random.PRNGKey(0)
    kx, kw = jax.random.split(key)
    scale = 1.0 / (D * C)
    weights = scale * jax.random.uniform(kw, (E, D, C, N), dtype=jnp.float32)
    x = jax.random.normal(kx, (B, E, L, D), dtype=jnp.float32)

    y = jax.block_until_ready(film_forward(x, kflipT, weights, evalT))
    assert y.shape == (B, E, C, pred_len), y.shape

    # float64 numpy reference of the original (unfused) einsum chain
    x64 = np.asarray(x, dtype=np.float64)
    k64 = np.asarray(kflipT, dtype=np.float64)
    w64 = np.asarray(weights, dtype=np.float64)
    e64 = np.asarray(evalT, dtype=np.float64)
    xf_ref = np.einsum('beld,ln->bedn', x64, k64)
    yf_ref = np.einsum('bedn,edcn->becn', xf_ref, w64)
    y_ref = np.einsum('becn,np->becp', yf_ref, e64)

    # tolerance covers f32 accumulation (and the changed d/n reduction order from the fusion)
    np.testing.assert_allclose(np.asarray(y, dtype=np.float64), y_ref, rtol=2e-3, atol=2e-3)
    print("KERNEL_OK")
</pallas_src>

<mosaic_0001>
module attributes {stable_mosaic.version = 11 : i64} {
  func.func @film_kernel(%arg0: memref<2x96xf32, #tpu.memory_space<vmem>>, %arg1: memref<96x1536xf32, #tpu.memory_space<vmem>>, %arg2: memref<1536x96xf32, #tpu.memory_space<vmem>>, %arg3: memref<2x96xf32, #tpu.memory_space<vmem>>) attributes {dimension_semantics = [], scalar_prefetch = 0 : i64, scratch_operands = 0 : i64, tpu.core_type = #tpu.core_type<tc>} {
    %c0 = arith.constant 0 : index
    %c0_0 = arith.constant 0 : index
    %0 = vector.load %arg0[%c0, %c0_0] : memref<2x96xf32, #tpu.memory_space<vmem>>, vector<2x96xf32>
    %c0_1 = arith.constant 0 : index
    %c0_2 = arith.constant 0 : index
    %1 = vector.load %arg1[%c0_1, %c0_2] : memref<96x1536xf32, #tpu.memory_space<vmem>>, vector<96x1536xf32>
    %cst = arith.constant dense<0.000000e+00> : vector<2x1536xf32>
    %2 = tpu.matmul %0, %1, %cst {dimension_numbers = #tpu.dot_dimension_numbers<[1], [0], [0], [1], [0, 0, 1, 1], [], []>} : vector<2x96xf32>, vector<96x1536xf32>, vector<2x1536xf32> -> vector<2x1536xf32>
    %c0_3 = arith.constant 0 : index
    %c0_4 = arith.constant 0 : index
    %3 = vector.load %arg2[%c0_3, %c0_4] : memref<1536x96xf32, #tpu.memory_space<vmem>>, vector<1536x96xf32>
    %cst_5 = arith.constant dense<0.000000e+00> : vector<2x96xf32>
    %4 = tpu.matmul %2, %3, %cst_5 {dimension_numbers = #tpu.dot_dimension_numbers<[1], [0], [0], [1], [0, 0, 1, 1], [], []>} : vector<2x1536xf32>, vector<1536x96xf32>, vector<2x96xf32> -> vector<2x96xf32>
    %c0_6 = arith.constant 0 : index
    %c0_7 = arith.constant 0 : index
    %5 = vector.load %arg3[%c0_6, %c0_7] : memref<2x96xf32, #tpu.memory_space<vmem>>, vector<2x96xf32>
    tpu.vector_store %arg3[%c0_6, %c0_7], %4 {strides = array<i32>} : memref<2x96xf32, #tpu.memory_space<vmem>>, vector<2x96xf32>,
    return
  }
}

</mosaic_0001>

<bundles_post_ra>
// kernel: film_forward.1
= control target key start
LH: loop header
LB: loop body
LE: loop exit
PB: predicated region body
PF: predicated region fallthrough
CT: control target
= control target key end

     0   :  { %v1424_v3 = vmov 0.0   ;;  %vm159_vm0 = vcmask 785408   ;;  %vm1201_vm1 = vcmask 779264   ;;  %s2479_s1 = inlined_call_operand.vmem [shape: f32[96,1536], index: 1, kind: input, shape index: {}]   ;;  %s2480_s0 = inlined_call_operand.vmem [shape: f32[2,96], index: 0, kind: input, shape index: {}]   ;;  %s2481_s2 = inlined_call_operand.vmem [shape: f32[1536,96], index: 2, kind: input, shape index: {}]   ;;  %s2482_s3 = inlined_call_operand.vmem [shape: f32[2,96], index: 3, kind: output, shape index: {}]  }
   0x1   :  { %v148_v0 = vld [vmem:[%s2479_s1 + $0x428] sm:$0xff]  ;;  %v150_v1 = vld [vmem:[%s2479_s1 + $0x438] sm:$0xff]  ;;  %v147_v2 = vld [vmem:[%s2479_s1 + $0x420] sm:$0xff]  ;;  %227 = vmatprep.mubr.f32.mxu0 %v1424_v3  ;;  %298 = vmatprep.mubr.f32.mxu1 %v1424_v3 }
   0x2   :  { %171 = vmatprep.subr.mxu0 %v148_v0  ;;  %242 = vmatprep.subr.mxu1 %v150_v1  ;;  %v149_v4 = vld [vmem:[%s2479_s1 + $0x430] sm:$0xff]  ;;  %v136_v5 = vld [vmem:[%s2479_s1 + $0x3c8] sm:$0xff]  ;;  %v138_v6 = vld [vmem:[%s2479_s1 + $0x3d8] sm:$0xff] }
   0x3   :  { %172 = vmatpush1.msra.mxu0 %v147_v2  ;;  %243 = vmatpush1.msra.mxu1 %v149_v4  ;;  %v135_v7 = vld [vmem:[%s2479_s1 + $0x3c0] sm:$0xff]  ;;  %v137_v8 = vld [vmem:[%s2479_s1 + $0x3d0] sm:$0xff]  ;;  %v124_v9 = vld [vmem:[%s2479_s1 + $0x368] sm:$0xff] }
   0x4   :  { %173 = vmatprep.subr.mxu0 %v136_v5  ;;  %244 = vmatprep.subr.mxu1 %v138_v6  ;;  %v126_v10 = vld [vmem:[%s2479_s1 + $0x378] sm:$0xff]  ;;  %v123_v11 = vld [vmem:[%s2479_s1 + $0x360] sm:$0xff]  ;;  %v125_v12 = vld [vmem:[%s2479_s1 + $0x370] sm:$0xff] }
   0x5   :  { %174 = vmatpush1.msra.mxu0 %v135_v7  ;;  %245 = vmatpush1.msra.mxu1 %v137_v8  ;;  %v112_v13 = vld [vmem:[%s2479_s1 + $0x308] sm:$0xff]  ;;  %v114_v14 = vld [vmem:[%s2479_s1 + $0x318] sm:$0xff]  ;;  %v111_v15 = vld [vmem:[%s2479_s1 + $0x300] sm:$0xff] }
   0x6   :  { %175 = vmatprep.subr.mxu0 %v124_v9  ;;  %246 = vmatprep.subr.mxu1 %v126_v10  ;;  %v113_v16 = vld [vmem:[%s2479_s1 + $0x310] sm:$0xff]  ;;  %v100_v17 = vld [vmem:[%s2479_s1 + $0x2a8] sm:$0xff]  ;;  %v102_v18 = vld [vmem:[%s2479_s1 + $0x2b8] sm:$0xff] }
   0x7   :  { %176 = vmatpush1.msra.mxu0 %v123_v11  ;;  %247 = vmatpush1.msra.mxu1 %v125_v12  ;;  %v99_v19 = vld [vmem:[%s2479_s1 + $0x2a0] sm:$0xff]  ;;  %v101_v20 = vld [vmem:[%s2479_s1 + $0x2b0] sm:$0xff]  ;;  %v88_v21 = vld [vmem:[%s2479_s1 + $0x248] sm:$0xff] }
   0x8   :  { %177 = vmatprep.subr.mxu0 %v112_v13  ;;  %248 = vmatprep.subr.mxu1 %v114_v14  ;;  %v90_v22 = vld [vmem:[%s2479_s1 + $0x258] sm:$0xff]  ;;  %v87_v23 = vld [vmem:[%s2479_s1 + $0x240] sm:$0xff]  ;;  %v89_v24 = vld [vmem:[%s2479_s1 + $0x250] sm:$0xff] }
   0x9   :  { %178 = vmatpush1.msra.mxu0 %v111_v15  ;;  %249 = vmatpush1.msra.mxu1 %v113_v16  ;;  %v76_v25 = vld [vmem:[%s2479_s1 + $0x1e8] sm:$0xff]  ;;  %v78_v26 = vld [vmem:[%s2479_s1 + $0x1f8] sm:$0xff]  ;;  %v75_v27 = vld [vmem:[%s2479_s1 + $0x1e0] sm:$0xff] }
   0xa   :  { %179 = vmatprep.subr.mxu0 %v100_v17  ;;  %250 = vmatprep.subr.mxu1 %v102_v18  ;;  %v77_v28 = vld [vmem:[%s2479_s1 + $0x1f0] sm:$0xff]  ;;  %v64_v29 = vld [vmem:[%s2479_s1 + $0x188] sm:$0xff]  ;;  %v66_v30 = vld [vmem:[%s2479_s1 + $0x198] sm:$0xff] }
   0xb   :  { %180 = vmatpush1.msra.mxu0 %v99_v19  ;;  %251 = vmatpush1.msra.mxu1 %v101_v20  ;;  %v63_v31 = vld [vmem:[%s2479_s1 + $0x180] sm:$0xff]  ;;  %v65_v32 = vld [vmem:[%s2479_s1 + $0x190] sm:$0xff]  ;;  %v52_v33 = vld [vmem:[%s2479_s1 + $0x128] sm:$0xff] }
   0xc   :  { %181 = vmatprep.subr.mxu0 %v88_v21  ;;  %252 = vmatprep.subr.mxu1 %v90_v22  ;;  %v54_v34 = vld [vmem:[%s2479_s1 + $0x138] sm:$0xff]  ;;  %v51_v35 = vld [vmem:[%s2479_s1 + $0x120] sm:$0xff]  ;;  %v53_v36 = vld [vmem:[%s2479_s1 + $0x130] sm:$0xff] }
   0xd   :  { %182 = vmatpush1.msra.mxu0 %v87_v23  ;;  %253 = vmatpush1.msra.mxu1 %v89_v24  ;;  %v40_v37 = vld [vmem:[%s2479_s1 + $0xc8] sm:$0xff]  ;;  %v42_v38 = vld [vmem:[%s2479_s1 + $0xd8] sm:$0xff]  ;;  %v39_v39 = vld [vmem:[%s2479_s1 + $0xc0] sm:$0xff] }
   0xe   :  { %183 = vmatprep.subr.mxu0 %v76_v25  ;;  %254 = vmatprep.subr.mxu1 %v78_v26  ;;  %v41_v40 = vld [vmem:[%s2479_s1 + $0xd0] sm:$0xff]  ;;  %v28_v41 = vld [vmem:[%s2479_s1 + $0x68] sm:$0xff]  ;;  %v30_v42 = vld [vmem:[%s2479_s1 + $0x78] sm:$0xff] }
   0xf   :  { %184 = vmatpush1.msra.mxu0 %v75_v27  ;;  %255 = vmatpush1.msra.mxu1 %v77_v28  ;;  %v27_v43 = vld [vmem:[%s2479_s1 + $0x60] sm:$0xff]  ;;  %v29_v44 = vld [vmem:[%s2479_s1 + $0x70] sm:$0xff]  ;;  %v16_v45 = vld [vmem:[%s2479_s1 + $0x8] sm:$0xff] }
  0x10   :  { %185 = vmatprep.subr.mxu0 %v64_v29  ;;  %256 = vmatprep.subr.mxu1 %v66_v30  ;;  %v18_v46 = vld [vmem:[%s2479_s1 + $0x18] sm:$0xff]  ;;  %v15_v47 = vld [vmem:[%s2479_s1] sm:$0xff]  ;;  %v17_v48 = vld [vmem:[%s2479_s1 + $0x10] sm:$0xff] }
  0x11   :  { %186 = vmatpush1.msra.mxu0 %v63_v31  ;;  %257 = vmatpush1.msra.mxu1 %v65_v32  ;;  %v1594_v49 = vld [vmem:[%s2480_s0] sm:$0x3]  ;;  %v152_v50 = vld [vmem:[%s2479_s1 + $0x448] sm:$0xff]  ;;  %v154_v51 = vld [vmem:[%s2479_s1 + $0x458] sm:$0xff] }
  0x12   :  { %187 = vmatprep.subr.mxu0 %v52_v33  ;;  %258 = vmatprep.subr.mxu1 %v54_v34  ;;  %v151_v52 = vld [vmem:[%s2479_s1 + $0x440] sm:$0xff]  ;;  %v153_v53 = vld [vmem:[%s2479_s1 + $0x450] sm:$0xff]  ;;  %v140_v54 = vld [vmem:[%s2479_s1 + $0x3e8] sm:$0xff] }
  0x13   :  { %188 = vmatpush1.msra.mxu0 %v51_v35  ;;  %259 = vmatpush1.msra.mxu1 %v53_v36  ;;  %v142_v55 = vld [vmem:[%s2479_s1 + $0x3f8] sm:$0xff]  ;;  %v139_v56 = vld [vmem:[%s2479_s1 + $0x3e0] sm:$0xff]  ;;  %v141_v57 = vld [vmem:[%s2479_s1 + $0x3f0] sm:$0xff] }
  0x14   :  { %189 = vmatprep.subr.mxu0 %v40_v37  ;;  %260 = vmatprep.subr.mxu1 %v42_v38  ;;  %v128_v58 = vld [vmem:[%s2479_s1 + $0x388] sm:$0xff]  ;;  %v130_v59 = vld [vmem:[%s2479_s1 + $0x398] sm:$0xff]  ;;  %v127_v60 = vld [vmem:[%s2479_s1 + $0x380] sm:$0xff] }
  0x15   :  { %190 = vmatpush1.msra.mxu0 %v39_v39  ;;  %261 = vmatpush1.msra.mxu1 %v41_v40  ;;  %v129_v61 = vld [vmem:[%s2479_s1 + $0x390] sm:$0xff]  ;;  %v116_v62 = vld [vmem:[%s2479_s1 + $0x328] sm:$0xff]  ;;  %v118_v63 = vld [vmem:[%s2479_s1 + $0x338] sm:$0xff] }
  0x16   :  { %191 = vmatprep.subr.mxu0 %v28_v41  ;;  %262 = vmatprep.subr.mxu1 %v30_v42  ;;  %v115_v0 = vld [vmem:[%s2479_s1 + $0x320] sm:$0xff]  ;;  %v117_v1 = vld [vmem:[%s2479_s1 + $0x330] sm:$0xff]  ;;  %v104_v2 = vld [vmem:[%s2479_s1 + $0x2c8] sm:$0xff] }
  0x17   :  { %192 = vmatpush1.msra.mxu0 %v27_v43  ;;  %263 = vmatpush1.msra.mxu1 %v29_v44  ;;  %v106_v4 = vld [vmem:[%s2479_s1 + $0x2d8] sm:$0xff]  ;;  %v103_v5 = vld [vmem:[%s2479_s1 + $0x2c0] sm:$0xff]  ;;  %v105_v6 = vld [vmem:[%s2479_s1 + $0x2d0] sm:$0xff] }
  0x18   :  { %193 = vmatprep.subr.mxu0 %v16_v45  ;;  %264 = vmatprep.subr.mxu1 %v18_v46  ;;  %v92_v7 = vld [vmem:[%s2479_s1 + $0x268] sm:$0xff]  ;;  %v94_v8 = vld [vmem:[%s2479_s1 + $0x278] sm:$0xff]  ;;  %v91_v9 = vld [vmem:[%s2479_s1 + $0x260] sm:$0xff] }
  0x19   :  { %194 = vmatpush1.msra.mxu0 %v15_v47  ;;  %265 = vmatpush1.msra.mxu1 %v17_v48  ;;  %v93_v10 = vld [vmem:[%s2479_s1 + $0x270] sm:$0xff]  ;;  %v80_v11 = vld [vmem:[%s2479_s1 + $0x208] sm:$0xff]  ;;  %v82_v12 = vld [vmem:[%s2479_s1 + $0x218] sm:$0xff] }
  0x1a   :  { %1207 = vmatmul.mubr.msk.f32.vlgmr.msra.gmra.mxu0 %vm159_vm0, %v1594_v49  ;;  %1208 = vmatmul.mubr.msk.f32.vlgmr.msra.gmra.mxu1 %vm159_vm0, %v1594_v49  ;;  %v79_v13 = vld [vmem:[%s2479_s1 + $0x200] sm:$0xff]  ;;  %v81_v14 = vld [vmem:[%s2479_s1 + $0x210] sm:$0xff]  ;;  %v68_v15 = vld [vmem:[%s2479_s1 + $0x1a8] sm:$0xff] }
  0x1b   :  { %313 = vmatprep.subr.mxu0 %v152_v50  ;;  %384 = vmatprep.subr.mxu1 %v154_v51  ;;  %v70_v16 = vld [vmem:[%s2479_s1 + $0x1b8] sm:$0xff]  ;;  %v67_v17 = vld [vmem:[%s2479_s1 + $0x1a0] sm:$0xff]  ;;  %v69_v18 = vld [vmem:[%s2479_s1 + $0x1b0] sm:$0xff] }
  0x1c   :  { %314 = vmatpush1.msra.mxu0 %v151_v52  ;;  %385 = vmatpush1.msra.mxu1 %v153_v53  ;;  %v56_v19 = vld [vmem:[%s2479_s1 + $0x148] sm:$0xff]  ;;  %v58_v20 = vld [vmem:[%s2479_s1 + $0x158] sm:$0xff]  ;;  %v55_v21 = vld [vmem:[%s2479_s1 + $0x140] sm:$0xff] }
  0x1d   :  { %315 = vmatprep.subr.mxu0 %v140_v54  ;;  %386 = vmatprep.subr.mxu1 %v142_v55  ;;  %v57_v22 = vld [vmem:[%s2479_s1 + $0x150] sm:$0xff]  ;;  %v44_v23 = vld [vmem:[%s2479_s1 + $0xe8] sm:$0xff]  ;;  %v46_v24 = vld [vmem:[%s2479_s1 + $0xf8] sm:$0xff] }
  0x1e   :  { %316 = vmatpush1.msra.mxu0 %v139_v56  ;;  %387 = vmatpush1.msra.mxu1 %v141_v57  ;;  %v43_v25 = vld [vmem:[%s2479_s1 + $0xe0] sm:$0xff]  ;;  %v45_v26 = vld [vmem:[%s2479_s1 + $0xf0] sm:$0xff]  ;;  %v32_v27 = vld [vmem:[%s2479_s1 + $0x88] sm:$0xff] }
  0x1f   :  { %317 = vmatprep.subr.mxu0 %v128_v58  ;;  %388 = vmatprep.subr.mxu1 %v130_v59  ;;  %v34_v28 = vld [vmem:[%s2479_s1 + $0x98] sm:$0xff]  ;;  %v31_v29 = vld [vmem:[%s2479_s1 + $0x80] sm:$0xff]  ;;  %v33_v30 = vld [vmem:[%s2479_s1 + $0x90] sm:$0xff] }
  0x20   :  { %318 = vmatpush1.msra.mxu0 %v127_v60  ;;  %389 = vmatpush1.msra.mxu1 %v129_v61  ;;  %v20_v31 = vld [vmem:[%s2479_s1 + $0x28] sm:$0xff]  ;;  %v19_v32 = vld [vmem:[%s2479_s1 + $0x20] sm:$0xff]  ;;  %v22_v33 = vld [vmem:[%s2479_s1 + $0x38] sm:$0xff] }
  0x21   :  { %319 = vmatprep.subr.mxu0 %v116_v62  ;;  %390 = vmatprep.subr.mxu1 %v118_v63  ;;  %v21_v34 = vld [vmem:[%s2479_s1 + $0x30] sm:$0xff]  ;;  %v156_v35 = vld [vmem:[%s2479_s1 + $0x468] sm:$0xff]  ;;  %v155_v36 = vld [vmem:[%s2479_s1 + $0x460] sm:$0xff] }
  0x22   :  { %320 = vmatpush1.msra.mxu0 %v115_v0  ;;  %391 = vmatpush1.msra.mxu1 %v117_v1  ;;  %v144_v37 = vld [vmem:[%s2479_s1 + $0x408] sm:$0xff]  ;;  %v158_v38 = vld [vmem:[%s2479_s1 + $0x478] sm:$0xff]  ;;  %v143_v39 = vld [vmem:[%s2479_s1 + $0x400] sm:$0xff] }
  0x23   :  { %321 = vmatprep.subr.mxu0 %v104_v2  ;;  %392 = vmatprep.subr.mxu1 %v106_v4  ;;  %v157_v40 = vld [vmem:[%s2479_s1 + $0x470] sm:$0xff]  ;;  %v132_v41 = vld [vmem:[%s2479_s1 + $0x3a8] sm:$0xff]  ;;  %v146_v42 = vld [vmem:[%s2479_s1 + $0x418] sm:$0xff] }
  0x24   :  { %322 = vmatpush1.msra.mxu0 %v103_v5  ;;  %393 = vmatpush1.msra.mxu1 %v105_v6  ;;  %v131_v43 = vld [vmem:[%s2479_s1 + $0x3a0] sm:$0xff]  ;;  %v145_v44 = vld [vmem:[%s2479_s1 + $0x410] sm:$0xff]  ;;  %v120_v45 = vld [vmem:[%s2479_s1 + $0x348] sm:$0xff] }
  0x25   :  { %323 = vmatprep.subr.mxu0 %v92_v7  ;;  %394 = vmatprep.subr.mxu1 %v94_v8  ;;  %v134_v46 = vld [vmem:[%s2479_s1 + $0x3b8] sm:$0xff]  ;;  %v119_v47 = vld [vmem:[%s2479_s1 + $0x340] sm:$0xff]  ;;  %v133_v48 = vld [vmem:[%s2479_s1 + $0x3b0] sm:$0xff] }
  0x26   :  { %324 = vmatpush1.msra.mxu0 %v91_v9  ;;  %395 = vmatpush1.msra.mxu1 %v93_v10  ;;  %v108_v50 = vld [vmem:[%s2479_s1 + $0x2e8] sm:$0xff]  ;;  %v122_v51 = vld [vmem:[%s2479_s1 + $0x358] sm:$0xff]  ;;  %v107_v52 = vld [vmem:[%s2479_s1 + $0x2e0] sm:$0xff] }
  0x27   :  { %325 = vmatprep.subr.mxu0 %v80_v11  ;;  %396 = vmatprep.subr.mxu1 %v82_v12  ;;  %v121_v53 = vld [vmem:[%s2479_s1 + $0x350] sm:$0xff]  ;;  %v96_v54 = vld [vmem:[%s2479_s1 + $0x288] sm:$0xff]  ;;  %v110_v55 = vld [vmem:[%s2479_s1 + $0x2f8] sm:$0xff] }
  0x28   :  { %326 = vmatpush1.msra.mxu0 %v79_v13  ;;  %397 = vmatpush1.msra.mxu1 %v81_v14  ;;  %v95_v56 = vld [vmem:[%s2479_s1 + $0x280] sm:$0xff]  ;;  %v109_v57 = vld [vmem:[%s2479_s1 + $0x2f0] sm:$0xff]  ;;  %v84_v58 = vld [vmem:[%s2479_s1 + $0x228] sm:$0xff] }
  0x29   :  { %327 = vmatprep.subr.mxu0 %v68_v15  ;;  %398 = vmatprep.subr.mxu1 %v70_v16  ;;  %v98_v59 = vld [vmem:[%s2479_s1 + $0x298] sm:$0xff]  ;;  %v83_v60 = vld [vmem:[%s2479_s1 + $0x220] sm:$0xff]  ;;  %v97_v61 = vld [vmem:[%s2479_s1 + $0x290] sm:$0xff] }
  0x2a   :  { %328 = vmatpush1.msra.mxu0 %v67_v17  ;;  %399 = vmatpush1.msra.mxu1 %v69_v18  ;;  %v72_v62 = vld [vmem:[%s2479_s1 + $0x1c8] sm:$0xff]  ;;  %v86_v63 = vld [vmem:[%s2479_s1 + $0x238] sm:$0xff]  ;;  %v71_v0 = vld [vmem:[%s2479_s1 + $0x1c0] sm:$0xff] }
  0x2b   :  { %329 = vmatprep.subr.mxu0 %v56_v19  ;;  %400 = vmatprep.subr.mxu1 %v58_v20  ;;  %v85_v1 = vld [vmem:[%s2479_s1 + $0x230] sm:$0xff]  ;;  %v60_v2 = vld [vmem:[%s2479_s1 + $0x168] sm:$0xff]  ;;  %v74_v4 = vld [vmem:[%s2479_s1 + $0x1d8] sm:$0xff] }
  0x2c   :  { %330 = vmatpush1.msra.mxu0 %v55_v21  ;;  %401 = vmatpush1.msra.mxu1 %v57_v22  ;;  %v59_v5 = vld [vmem:[%s2479_s1 + $0x160] sm:$0xff]  ;;  %v73_v6 = vld [vmem:[%s2479_s1 + $0x1d0] sm:$0xff]  ;;  %v48_v7 = vld [vmem:[%s2479_s1 + $0x108] sm:$0xff] }
  0x2d   :  { %331 = vmatprep.subr.mxu0 %v44_v23  ;;  %402 = vmatprep.subr.mxu1 %v46_v24  ;;  %v62_v8 = vld [vmem:[%s2479_s1 + $0x178] sm:$0xff]  ;;  %v47_v9 = vld [vmem:[%s2479_s1 + $0x100] sm:$0xff]  ;;  %v61_v10 = vld [vmem:[%s2479_s1 + $0x170] sm:$0xff] }
  0x2e   :  { %332 = vmatpush1.msra.mxu0 %v43_v25  ;;  %403 = vmatpush1.msra.mxu1 %v45_v26  ;;  %v36_v11 = vld [vmem:[%s2479_s1 + $0xa8] sm:$0xff]  ;;  %v50_v12 = vld [vmem:[%s2479_s1 + $0x118] sm:$0xff]  ;;  %v35_v13 = vld [vmem:[%s2479_s1 + $0xa0] sm:$0xff] }
  0x2f   :  { %333 = vmatprep.subr.mxu0 %v32_v27  ;;  %404 = vmatprep.subr.mxu1 %v34_v28  ;;  %v49_v14 = vld [vmem:[%s2479_s1 + $0x110] sm:$0xff]  ;;  %v24_v15 = vld [vmem:[%s2479_s1 + $0x48] sm:$0xff]  ;;  %v38_v16 = vld [vmem:[%s2479_s1 + $0xb8] sm:$0xff] }
  0x30   :  { %334 = vmatpush1.msra.mxu0 %v31_v29  ;;  %405 = vmatpush1.msra.mxu1 %v33_v30  ;;  %v23_v17 = vld [vmem:[%s2479_s1 + $0x40] sm:$0xff]  ;;  %v37_v18 = vld [vmem:[%s2479_s1 + $0xb0] sm:$0xff]  ;;  %v26_v19 = vld [vmem:[%s2479_s1 + $0x58] sm:$0xff] }
  0x31   :  { %335 = vmatprep.subr.mxu0 %v20_v31  ;;  %369 = vmatprep.mubr.f32.mxu0 %v1424_v3  ;;  %v25_v20 = vld [vmem:[%s2479_s1 + $0x50] sm:$0xff]  ;;  %v620_v21 = vld [vmem:[%s2481_s2 + $0xf8] sm:$0xff]  ;;  %v618_v28 = vld [vmem:[%s2481_s2 + $0xe8] sm:$0xff] }
  0x32   :  { %336 = vmatpush1.msra.mxu0 %v19_v32  ;;  %406 = vmatprep.subr.mxu1 %v22_v33  ;;  %v652_v22 = vld [vmem:[%s2481_s2 + $0x1f8] sm:$0xff]  ;;  %v619_v25 = vld [vmem:[%s2481_s2 + $0xf0] sm:$0xff]  ;;  %v650_v29 = vld [vmem:[%s2481_s2 + $0x1e8] sm:$0xff] }
  0x33   :  { %1209 = vmatmul.mubr.msk.f32.vlgmr.msra.gmra.mxu0 %vm159_vm0, %v1594_v49  ;;  %407 = vmatpush1.msra.mxu1 %v21_v34  ;;  %v604_v23 = vld [vmem:[%s2481_s2 + $0x78] sm:$0xff]  ;;  %v651_v26 = vld [vmem:[%s2481_s2 + $0x1f0] sm:$0xff]  ;;  %v634_v30 = vld [vmem:[%s2481_s2 + $0x168] sm:$0xff] }
  0x34   :  { %440 = vmatprep.mubr.f32.mxu1 %v1424_v3  ;;  %455 = vmatprep.subr.mxu0 %v156_v35  ;;  %v636_v24 = vld [vmem:[%s2481_s2 + $0x178] sm:$0xff]  ;;  %v635_v27 = vld [vmem:[%s2481_s2 + $0x170] sm:$0xff]  ;;  %v617_v31 = vld [vmem:[%s2481_s2 + $0xe0] sm:$0xff] }
  0x35   :  { %1210 = vmatmul.mubr.msk.f32.vlgmr.msra.gmra.mxu1 %vm159_vm0, %v1594_v49  ;;  %456 = vmatpush1.msra.mxu0 %v155_v36  ;;  %v649_v32 = vld [vmem:[%s2481_s2 + $0x1e0] sm:$0xff]  ;;  %v616_v35 = vld [vmem:[%s2481_s2 + $0xd8] sm:$0xff] }
  0x36   :  { %457 = vmatprep.subr.mxu0 %v144_v37  ;;  %526 = vmatprep.subr.mxu1 %v158_v38  ;;  %v601_v33 = vld [vmem:[%s2481_s2 + $0x60] sm:$0xff]  ;;  %v648_v36 = vld [vmem:[%s2481_s2 + $0x1d8] sm:$0xff] }
  0x37   :  { %458 = vmatpush1.msra.mxu0 %v143_v39  ;;  %527 = vmatpush1.msra.mxu1 %v157_v40  ;;  %v633_v34 = vld [vmem:[%s2481_s2 + $0x160] sm:$0xff]  ;;  %v600_v37 = vld [vmem:[%s2481_s2 + $0x58] sm:$0xff]  ;;  %v615_v39 = vld [vmem:[%s2481_s2 + $0xd0] sm:$0xff] }
  0x38   :  { %459 = vmatprep.subr.mxu0 %v132_v41  ;;  %528 = vmatprep.subr.mxu1 %v146_v42  ;;  %v632_v38 = vld [vmem:[%s2481_s2 + $0x158] sm:$0xff]  ;;  %v647_v40 = vld [vmem:[%s2481_s2 + $0x1d0] sm:$0xff] }
  0x39   :  { %460 = vmatpush1.msra.mxu0 %v131_v43  ;;  %529 = vmatpush1.msra.mxu1 %v145_v44  ;;  %v599_v41 = vld [vmem:[%s2481_s2 + $0x50] sm:$0xff]  ;;  %v614_v43 = vld [vmem:[%s2481_s2 + $0xc8] sm:$0xff] }
  0x3a   :  { %461 = vmatprep.subr.mxu0 %v120_v45  ;;  %530 = vmatprep.subr.mxu1 %v134_v46  ;;  %v631_v42 = vld [vmem:[%s2481_s2 + $0x150] sm:$0xff]  ;;  %v646_v44 = vld [vmem:[%s2481_s2 + $0x1c8] sm:$0xff] }
  0x3b   :  { %462 = vmatpush1.msra.mxu0 %v119_v47  ;;  %531 = vmatpush1.msra.mxu1 %v133_v48  ;;  %v598_v45 = vld [vmem:[%s2481_s2 + $0x48] sm:$0xff]  ;;  %v613_v47 = vld [vmem:[%s2481_s2 + $0xc0] sm:$0xff] }
  0x3c   :  { %463 = vmatprep.subr.mxu0 %v108_v50  ;;  %532 = vmatprep.subr.mxu1 %v122_v51  ;;  %v630_v46 = vld [vmem:[%s2481_s2 + $0x148] sm:$0xff]  ;;  %v645_v48 = vld [vmem:[%s2481_s2 + $0x1c0] sm:$0xff] }
  0x3d   :  { %464 = vmatpush1.msra.mxu0 %v107_v52  ;;  %533 = vmatpush1.msra.mxu1 %v121_v53  ;;  %v597_v50 = vld [vmem:[%s2481_s2 + $0x40] sm:$0xff]  ;;  %v612_v52 = vld [vmem:[%s2481_s2 + $0xb8] sm:$0xff] }
  0x3e   :  { %465 = vmatprep.subr.mxu0 %v96_v54  ;;  %534 = vmatprep.subr.mxu1 %v110_v55  ;;  %v629_v51 = vld [vmem:[%s2481_s2 + $0x140] sm:$0xff]  ;;  %v644_v53 = vld [vmem:[%s2481_s2 + $0x1b8] sm:$0xff] }
  0x3f   :  { %466 = vmatpush1.msra.mxu0 %v95_v56  ;;  %535 = vmatpush1.msra.mxu1 %v109_v57  ;;  %v596_v54 = vld [vmem:[%s2481_s2 + $0x38] sm:$0xff]  ;;  %v611_v56 = vld [vmem:[%s2481_s2 + $0xb0] sm:$0xff] }
  0x40   :  { %467 = vmatprep.subr.mxu0 %v84_v58  ;;  %536 = vmatprep.subr.mxu1 %v98_v59  ;;  %v628_v55 = vld [vmem:[%s2481_s2 + $0x138] sm:$0xff]  ;;  %v643_v57 = vld [vmem:[%s2481_s2 + $0x1b0] sm:$0xff] }
  0x41   :  { %468 = vmatpush1.msra.mxu0 %v83_v60  ;;  %537 = vmatpush1.msra.mxu1 %v97_v61  ;;  %v595_v58 = vld [vmem:[%s2481_s2 + $0x30] sm:$0xff]  ;;  %v610_v60 = vld [vmem:[%s2481_s2 + $0xa8] sm:$0xff] }
  0x42   :  { %469 = vmatprep.subr.mxu0 %v72_v62  ;;  %538 = vmatprep.subr.mxu1 %v86_v63  ;;  %v627_v59 = vld [vmem:[%s2481_s2 + $0x130] sm:$0xff]  ;;  %v642_v61 = vld [vmem:[%s2481_s2 + $0x1a8] sm:$0xff] }
  0x43   :  { %470 = vmatpush1.msra.mxu0 %v71_v0  ;;  %539 = vmatpush1.msra.mxu1 %v85_v1  ;;  %v594_v62 = vld [vmem:[%s2481_s2 + $0x28] sm:$0xff]  ;;  %v609_v0 = vld [vmem:[%s2481_s2 + $0xa0] sm:$0xff] }
  0x44   :  { %471 = vmatprep.subr.mxu0 %v60_v2  ;;  %540 = vmatprep.subr.mxu1 %v74_v4  ;;  %v626_v63 = vld [vmem:[%s2481_s2 + $0x128] sm:$0xff]  ;;  %v641_v1 = vld [vmem:[%s2481_s2 + $0x1a0] sm:$0xff] }
  0x45   :  { %472 = vmatpush1.msra.mxu0 %v59_v5  ;;  %541 = vmatpush1.msra.mxu1 %v73_v6  ;;  %v593_v2 = vld [vmem:[%s2481_s2 + $0x20] sm:$0xff]  ;;  %v608_v5 = vld [vmem:[%s2481_s2 + $0x98] sm:$0xff] }
  0x46   :  { %473 = vmatprep.subr.mxu0 %v48_v7  ;;  %542 = vmatprep.subr.mxu1 %v62_v8  ;;  %v625_v4 = vld [vmem:[%s2481_s2 + $0x120] sm:$0xff]  ;;  %v640_v6 = vld [vmem:[%s2481_s2 + $0x198] sm:$0xff] }
  0x47   :  { %474 = vmatpush1.msra.mxu0 %v47_v9  ;;  %543 = vmatpush1.msra.mxu1 %v61_v10  ;;  %v592_v7 = vld [vmem:[%s2481_s2 + $0x18] sm:$0xff]  ;;  %v607_v9 = vld [vmem:[%s2481_s2 + $0x90] sm:$0xff] }
  0x48   :  { %475 = vmatprep.subr.mxu0 %v36_v11  ;;  %544 = vmatprep.subr.mxu1 %v50_v12  ;;  %v624_v8 = vld [vmem:[%s2481_s2 + $0x118] sm:$0xff]  ;;  %v639_v10 = vld [vmem:[%s2481_s2 + $0x190] sm:$0xff] }
  0x49   :  { %476 = vmatpush1.msra.mxu0 %v35_v13  ;;  %545 = vmatpush1.msra.mxu1 %v49_v14  ;;  %v591_v11 = vld [vmem:[%s2481_s2 + $0x10] sm:$0xff]  ;;  %v606_v13 = vld [vmem:[%s2481_s2 + $0x88] sm:$0xff] }
  0x4a   :  { %477 = vmatprep.subr.mxu0 %v24_v15  ;;  %546 = vmatprep.subr.mxu1 %v38_v16  ;;  %v623_v12 = vld [vmem:[%s2481_s2 + $0x110] sm:$0xff]  ;;  %v638_v14 = vld [vmem:[%s2481_s2 + $0x188] sm:$0xff] }
  0x4b   :  { %478 = vmatpush1.msra.mxu0 %v23_v17  ;;  %511 = vmatprep.mubr.f32.mxu0 %v1424_v3  ;;  %v590_v15 = vld [vmem:[%s2481_s2 + $0x8] sm:$0xff]  ;;  %v605_v17 = vld [vmem:[%s2481_s2 + $0x80] sm:$0xff] }
  0x4c   :  { %547 = vmatpush1.msra.mxu1 %v37_v18  ;;  %1211 = vmatmul.mubr.msk.f32.vlgmr.msra.gmra.mxu0 %vm159_vm0, %v1594_v49  ;;  %v622_v16 = vld [vmem:[%s2481_s2 + $0x108] sm:$0xff]  ;;  %v637_v18 = vld [vmem:[%s2481_s2 + $0x180] sm:$0xff] }
  0x4d   :  { %548 = vmatprep.subr.mxu1 %v26_v19  ;;  %582 = vmatprep.mubr.f32.mxu1 %v1424_v3  ;;  %v603_v3 = vld [vmem:[%s2481_s2 + $0x70] sm:$0xff]  ;;  %v589_v19 = vld [vmem:[%s2481_s2] sm:$0xff] }
  0x4e   :  { %549 = vmatpush1.msra.mxu1 %v25_v20  ;;  %1213 = vmatprep.subr.mxu0 %v620_v21  ;;  %v621_v20 = vld [vmem:[%s2481_s2 + $0x100] sm:$0xff]  ;;  %v684_v21 = vld [vmem:[%s2481_s2 + $0x2f8] sm:$0xff] }
  0x4f   :  { %1212 = vmatmul.mubr.msk.f32.vlgmr.msra.gmra.mxu1 %vm159_vm0, %v1594_v49  ;;  %1248 = vmatprep.subr.mxu1 %v652_v22  ;;  %v602_v49 = vld [vmem:[%s2481_s2 + $0x68] sm:$0xff]  ;;  %v716_v22 = vld [vmem:[%s2481_s2 + $0x3f8] sm:$0xff] }
  0x50   :  { %1214 = vmatpush3.msra.mxu0 %v604_v23  ;;  %1249 = vmatpush3.msra.mxu1 %v636_v24 }
  0x51   :  { %1215 = vmatprep.subr.mxu0 %v619_v25  ;;  %1250 = vmatprep.subr.mxu1 %v651_v26 }
  0x52   :  { %1216 = vmatpush3.msra.mxu0 %v603_v3  ;;  %1251 = vmatpush3.msra.mxu1 %v635_v27  ;;  %v668_v3 = vld [vmem:[%s2481_s2 + $0x278] sm:$0xff] }
  0x53   :  { %1217 = vmatprep.subr.mxu0 %v618_v28  ;;  %1252 = vmatprep.subr.mxu1 %v650_v29  ;;  %v700_v27 = vld [vmem:[%s2481_s2 + $0x378] sm:$0xff]  ;;  %v683_v28 = vld [vmem:[%s2481_s2 + $0x2f0] sm:$0xff] }
  0x54   :  { %1218 = vmatpush3.msra.mxu0 %v602_v49  ;;  %1253 = vmatpush3.msra.mxu1 %v634_v30  ;;  %v715_v29 = vld [vmem:[%s2481_s2 + $0x3f0] sm:$0xff] }
  0x55   :  { %1219 = vmatprep.subr.mxu0 %v617_v31  ;;  %1254 = vmatprep.subr.mxu1 %v649_v32  ;;  %v667_v49 = vld [vmem:[%s2481_s2 + $0x270] sm:$0xff]  ;;  %v682_v31 = vld [vmem:[%s2481_s2 + $0x2e8] sm:$0xff] }
  0x56   :  { %1220 = vmatpush3.msra.mxu0 %v601_v33  ;;  %1255 = vmatpush3.msra.mxu1 %v633_v34  ;;  %v699_v30 = vld [vmem:[%s2481_s2 + $0x370] sm:$0xff]  ;;  %v714_v32 = vld [vmem:[%s2481_s2 + $0x3e8] sm:$0xff] }
  0x57   :  { %1221 = vmatprep.subr.mxu0 %v616_v35  ;;  %1256 = vmatprep.subr.mxu1 %v648_v36  ;;  %v666_v33 = vld [vmem:[%s2481_s2 + $0x268] sm:$0xff]  ;;  %v681_v35 = vld [vmem:[%s2481_s2 + $0x2e0] sm:$0xff] }
  0x58   :  { %1222 = vmatpush3.msra.mxu0 %v600_v37  ;;  %1257 = vmatpush3.msra.mxu1 %v632_v38  ;;  %v698_v34 = vld [vmem:[%s2481_s2 + $0x368] sm:$0xff]  ;;  %v713_v36 = vld [vmem:[%s2481_s2 + $0x3e0] sm:$0xff] }
  0x59   :  { %1223 = vmatprep.subr.mxu0 %v615_v39  ;;  %1258 = vmatprep.subr.mxu1 %v647_v40  ;;  %v665_v37 = vld [vmem:[%s2481_s2 + $0x260] sm:$0xff]  ;;  %v680_v39 = vld [vmem:[%s2481_s2 + $0x2d8] sm:$0xff] }
  0x5a   :  { %1224 = vmatpush3.msra.mxu0 %v599_v41  ;;  %1259 = vmatpush3.msra.mxu1 %v631_v42  ;;  %v697_v38 = vld [vmem:[%s2481_s2 + $0x360] sm:$0xff]  ;;  %v712_v40 = vld [vmem:[%s2481_s2 + $0x3d8] sm:$0xff] }
  0x5b   :  { %1225 = vmatprep.subr.mxu0 %v614_v43  ;;  %1260 = vmatprep.subr.mxu1 %v646_v44  ;;  %v664_v41 = vld [vmem:[%s2481_s2 + $0x258] sm:$0xff]  ;;  %v679_v43 = vld [vmem:[%s2481_s2 + $0x2d0] sm:$0xff] }
  0x5c   :  { %1226 = vmatpush3.msra.mxu0 %v598_v45  ;;  %1261 = vmatpush3.msra.mxu1 %v630_v46  ;;  %v696_v42 = vld [vmem:[%s2481_s2 + $0x358] sm:$0xff]  ;;  %v711_v44 = vld [vmem:[%s2481_s2 + $0x3d0] sm:$0xff] }
  0x5d   :  { %1227 = vmatprep.subr.mxu0 %v613_v47  ;;  %1262 = vmatprep.subr.mxu1 %v645_v48  ;;  %v663_v45 = vld [vmem:[%s2481_s2 + $0x250] sm:$0xff]  ;;  %v678_v47 = vld [vmem:[%s2481_s2 + $0x2c8] sm:$0xff] }
  0x5e   :  { %1228 = vmatpush3.msra.mxu0 %v597_v50  ;;  %1263 = vmatpush3.msra.mxu1 %v629_v51  ;;  %v695_v46 = vld [vmem:[%s2481_s2 + $0x350] sm:$0xff]  ;;  %v710_v48 = vld [vmem:[%s2481_s2 + $0x3c8] sm:$0xff] }
  0x5f   :  { %1229 = vmatprep.subr.mxu0 %v612_v52  ;;  %1264 = vmatprep.subr.mxu1 %v644_v53  ;;  %v662_v50 = vld [vmem:[%s2481_s2 + $0x248] sm:$0xff]  ;;  %v677_v52 = vld [vmem:[%s2481_s2 + $0x2c0] sm:$0xff] }
  0x60   :  { %1230 = vmatpush3.msra.mxu0 %v596_v54  ;;  %1265 = vmatpush3.msra.mxu1 %v628_v55  ;;  %v694_v51 = vld [vmem:[%s2481_s2 + $0x348] sm:$0xff]  ;;  %v709_v53 = vld [vmem:[%s2481_s2 + $0x3c0] sm:$0xff] }
  0x61   :  { %1231 = vmatprep.subr.mxu0 %v611_v56  ;;  %1266 = vmatprep.subr.mxu1 %v643_v57  ;;  %v661_v54 = vld [vmem:[%s2481_s2 + $0x240] sm:$0xff]  ;;  %v676_v56 = vld [vmem:[%s2481_s2 + $0x2b8] sm:$0xff] }
  0x62   :  { %1232 = vmatpush3.msra.mxu0 %v595_v58  ;;  %1267 = vmatpush3.msra.mxu1 %v627_v59  ;;  %v693_v55 = vld [vmem:[%s2481_s2 + $0x340] sm:$0xff]  ;;  %v708_v57 = vld [vmem:[%s2481_s2 + $0x3b8] sm:$0xff] }
  0x63   :  { %1233 = vmatprep.subr.mxu0 %v610_v60  ;;  %1268 = vmatprep.subr.mxu1 %v642_v61  ;;  %v660_v58 = vld [vmem:[%s2481_s2 + $0x238] sm:$0xff]  ;;  %v675_v60 = vld [vmem:[%s2481_s2 + $0x2b0] sm:$0xff] }
  0x64   :  { %1234 = vmatpush3.msra.mxu0 %v594_v62  ;;  %1269 = vmatpush3.msra.mxu1 %v626_v63  ;;  %v692_v59 = vld [vmem:[%s2481_s2 + $0x338] sm:$0xff]  ;;  %v707_v61 = vld [vmem:[%s2481_s2 + $0x3b0] sm:$0xff] }
  0x65   :  { %1235 = vmatprep.subr.mxu0 %v609_v0  ;;  %1270 = vmatprep.subr.mxu1 %v641_v1  ;;  %v659_v62 = vld [vmem:[%s2481_s2 + $0x230] sm:$0xff]  ;;  %v674_v0 = vld [vmem:[%s2481_s2 + $0x2a8] sm:$0xff] }
  0x66   :  { %1236 = vmatpush3.msra.mxu0 %v593_v2  ;;  %1271 = vmatpush3.msra.mxu1 %v625_v4  ;;  %v691_v63 = vld [vmem:[%s2481_s2 + $0x330] sm:$0xff]  ;;  %v706_v1 = vld [vmem:[%s2481_s2 + $0x3a8] sm:$0xff] }
  0x67   :  { %1237 = vmatprep.subr.mxu0 %v608_v5  ;;  %1272 = vmatprep.subr.mxu1 %v640_v6  ;;  %v658_v2 = vld [vmem:[%s2481_s2 + $0x228] sm:$0xff]  ;;  %v673_v5 = vld [vmem:[%s2481_s2 + $0x2a0] sm:$0xff] }
  0x68   :  { %1238 = vmatpush3.msra.mxu0 %v592_v7  ;;  %1273 = vmatpush3.msra.mxu1 %v624_v8  ;;  %v690_v4 = vld [vmem:[%s2481_s2 + $0x328] sm:$0xff]  ;;  %v705_v6 = vld [vmem:[%s2481_s2 + $0x3a0] sm:$0xff] }
  0x69   :  { %1239 = vmatprep.subr.mxu0 %v607_v9  ;;  %1274 = vmatprep.subr.mxu1 %v639_v10  ;;  %v657_v7 = vld [vmem:[%s2481_s2 + $0x220] sm:$0xff]  ;;  %v672_v9 = vld [vmem:[%s2481_s2 + $0x298] sm:$0xff] }
  0x6a   :  { %1240 = vmatpush3.msra.mxu0 %v591_v11  ;;  %1275 = vmatpush3.msra.mxu1 %v623_v12  ;;  %v689_v8 = vld [vmem:[%s2481_s2 + $0x320] sm:$0xff]  ;;  %v704_v10 = vld [vmem:[%s2481_s2 + $0x398] sm:$0xff] }
  0x6b   :  { %1241 = vmatprep.subr.mxu0 %v606_v13  ;;  %1276 = vmatprep.subr.mxu1 %v638_v14  ;;  %v656_v11 = vld [vmem:[%s2481_s2 + $0x218] sm:$0xff]  ;;  %v671_v13 = vld [vmem:[%s2481_s2 + $0x290] sm:$0xff] }
  0x6c   :  { %1242 = vmatpush3.msra.mxu0 %v590_v15  ;;  %1277 = vmatpush3.msra.mxu1 %v622_v16  ;;  %v688_v12 = vld [vmem:[%s2481_s2 + $0x318] sm:$0xff]  ;;  %v703_v14 = vld [vmem:[%s2481_s2 + $0x390] sm:$0xff] }
  0x6d   :  { %1243 = vmatprep.subr.mxu0 %v605_v17  ;;  %1278 = vmatprep.subr.mxu1 %v637_v18  ;;  %v655_v16 = vld [vmem:[%s2481_s2 + $0x210] sm:$0xff] }
  0x6e   :  { %1244 = vmatpush3.msra.mxu0 %v589_v19  ;;  %1279 = vmatpush3.msra.mxu1 %v621_v20  ;;  %v687_v17 = vld [vmem:[%s2481_s2 + $0x310] sm:$0xff]  ;;  %v670_v19 = vld [vmem:[%s2481_s2 + $0x288] sm:$0xff] }
  0x6f   :  { %1283 = vmatprep.subr.mxu0 %v684_v21  ;;  %1318 = vmatprep.subr.mxu1 %v716_v22  ;;  %v702_v20 = vld [vmem:[%s2481_s2 + $0x388] sm:$0xff] }
  0x70   :  { %v654_v21 = vld [vmem:[%s2481_s2 + $0x208] sm:$0xff] }
  0x71   :  { %v686_v22 = vld [vmem:[%s2481_s2 + $0x308] sm:$0xff] }
  0xda   :  { %v229_v23 = vpop.f32.mrf.mxu0  ;;  %v300_v24 = vpop.f32.mrf.mxu1 }
  0xdc   :  { %v231_v25 = vpop.f32.mrf.mxu0  ;;  %v302_v26 = vpop.f32.mrf.mxu1 }
  0xdd   :  { %845 = vmatprep.mubr.f32.mxu0 %v231_v25  ;;  %915 = vmatprep.mubr.f32.mxu1 %v302_v26  ;;  %v701_v25 = vld [vmem:[%s2481_s2 + $0x380] sm:$0xff] }
  0xde   :  { %846 = vmatmul.mubr.f32.vlgmr.msra.gmra.mxu0 %v229_v23  ;;  %916 = vmatmul.mubr.f32.vlgmr.msra.gmra.mxu1 %v300_v24  ;;  %v669_v24 = vld [vmem:[%s2481_s2 + $0x280] sm:$0xff] }
  0xdf   :  { %1284 = vmatpush3.msra.mxu0 %v668_v3  ;;  %1319 = vmatpush3.msra.mxu1 %v700_v27  ;;  %v653_v26 = vld [vmem:[%s2481_s2 + $0x200] sm:$0xff] }
  0xe0   :  { %1285 = vmatprep.subr.mxu0 %v683_v28  ;;  %1320 = vmatprep.subr.mxu1 %v715_v29  ;;  %v685_v27 = vld [vmem:[%s2481_s2 + $0x300] sm:$0xff]  ;;  %v748_v28 = vld [vmem:[%s2481_s2 + $0x4f8] sm:$0xff] }
  0xe1   :  { %1286 = vmatpush3.msra.mxu0 %v667_v49  ;;  %1321 = vmatpush3.msra.mxu1 %v699_v30  ;;  %v780_v29 = vld [vmem:[%s2481_s2 + $0x5f8] sm:$0xff] }
  0xe2   :  { %1287 = vmatprep.subr.mxu0 %v682_v31  ;;  %1322 = vmatprep.subr.mxu1 %v714_v32  ;;  %v732_v49 = vld [vmem:[%s2481_s2 + $0x478] sm:$0xff]  ;;  %v747_v31 = vld [vmem:[%s2481_s2 + $0x4f0] sm:$0xff] }
  0xe3   :  { %1288 = vmatpush3.msra.mxu0 %v666_v33  ;;  %1323 = vmatpush3.msra.mxu1 %v698_v34  ;;  %v764_v30 = vld [vmem:[%s2481_s2 + $0x578] sm:$0xff]  ;;  %v779_v32 = vld [vmem:[%s2481_s2 + $0x5f0] sm:$0xff] }
  0xe4   :  { %1289 = vmatprep.subr.mxu0 %v681_v35  ;;  %1324 = vmatprep.subr.mxu1 %v713_v36  ;;  %v731_v33 = vld [vmem:[%s2481_s2 + $0x470] sm:$0xff]  ;;  %v746_v35 = vld [vmem:[%s2481_s2 + $0x4e8] sm:$0xff] }
  0xe5   :  { %1290 = vmatpush3.msra.mxu0 %v665_v37  ;;  %1325 = vmatpush3.msra.mxu1 %v697_v38  ;;  %v763_v34 = vld [vmem:[%s2481_s2 + $0x570] sm:$0xff]  ;;  %v778_v36 = vld [vmem:[%s2481_s2 + $0x5e8] sm:$0xff] }
  0xe6   :  { %1291 = vmatprep.subr.mxu0 %v680_v39  ;;  %1326 = vmatprep.subr.mxu1 %v712_v40  ;;  %v730_v37 = vld [vmem:[%s2481_s2 + $0x468] sm:$0xff]  ;;  %v745_v39 = vld [vmem:[%s2481_s2 + $0x4e0] sm:$0xff] }
  0xe7   :  { %1292 = vmatpush3.msra.mxu0 %v664_v41  ;;  %1327 = vmatpush3.msra.mxu1 %v696_v42  ;;  %v762_v38 = vld [vmem:[%s2481_s2 + $0x568] sm:$0xff]  ;;  %v777_v40 = vld [vmem:[%s2481_s2 + $0x5e0] sm:$0xff] }
  0xe8   :  { %1293 = vmatprep.subr.mxu0 %v679_v43  ;;  %1328 = vmatprep.subr.mxu1 %v711_v44  ;;  %v729_v41 = vld [vmem:[%s2481_s2 + $0x460] sm:$0xff]  ;;  %v744_v43 = vld [vmem:[%s2481_s2 + $0x4d8] sm:$0xff] }
  0xe9   :  { %1294 = vmatpush3.msra.mxu0 %v663_v45  ;;  %1329 = vmatpush3.msra.mxu1 %v695_v46  ;;  %v761_v42 = vld [vmem:[%s2481_s2 + $0x560] sm:$0xff]  ;;  %v776_v44 = vld [vmem:[%s2481_s2 + $0x5d8] sm:$0xff] }
  0xea   :  { %1295 = vmatprep.subr.mxu0 %v678_v47  ;;  %1330 = vmatprep.subr.mxu1 %v710_v48  ;;  %v728_v45 = vld [vmem:[%s2481_s2 + $0x458] sm:$0xff]  ;;  %v743_v47 = vld [vmem:[%s2481_s2 + $0x4d0] sm:$0xff] }
  0xeb   :  { %1296 = vmatpush3.msra.mxu0 %v662_v50  ;;  %1331 = vmatpush3.msra.mxu1 %v694_v51  ;;  %v760_v46 = vld [vmem:[%s2481_s2 + $0x558] sm:$0xff]  ;;  %v775_v48 = vld [vmem:[%s2481_s2 + $0x5d0] sm:$0xff] }
  0xec   :  { %1297 = vmatprep.subr.mxu0 %v677_v52  ;;  %1332 = vmatprep.subr.mxu1 %v709_v53  ;;  %v727_v50 = vld [vmem:[%s2481_s2 + $0x450] sm:$0xff]  ;;  %v742_v52 = vld [vmem:[%s2481_s2 + $0x4c8] sm:$0xff] }
  0xed   :  { %1298 = vmatpush3.msra.mxu0 %v661_v54  ;;  %1333 = vmatpush3.msra.mxu1 %v693_v55  ;;  %v759_v51 = vld [vmem:[%s2481_s2 + $0x550] sm:$0xff]  ;;  %v774_v53 = vld [vmem:[%s2481_s2 + $0x5c8] sm:$0xff] }
  0xee   :  { %1299 = vmatprep.subr.mxu0 %v676_v56  ;;  %1334 = vmatprep.subr.mxu1 %v708_v57  ;;  %v726_v54 = vld [vmem:[%s2481_s2 + $0x448] sm:$0xff]  ;;  %v741_v56 = vld [vmem:[%s2481_s2 + $0x4c0] sm:$0xff] }
  0xef   :  { %1300 = vmatpush3.msra.mxu0 %v660_v58  ;;  %1335 = vmatpush3.msra.mxu1 %v692_v59  ;;  %v758_v55 = vld [vmem:[%s2481_s2 + $0x548] sm:$0xff]  ;;  %v773_v57 = vld [vmem:[%s2481_s2 + $0x5c0] sm:$0xff] }
  0xf0   :  { %1301 = vmatprep.subr.mxu0 %v675_v60  ;;  %1336 = vmatprep.subr.mxu1 %v707_v61  ;;  %v725_v58 = vld [vmem:[%s2481_s2 + $0x440] sm:$0xff]  ;;  %v740_v60 = vld [vmem:[%s2481_s2 + $0x4b8] sm:$0xff] }
  0xf1   :  { %1302 = vmatpush3.msra.mxu0 %v659_v62  ;;  %1337 = vmatpush3.msra.mxu1 %v691_v63  ;;  %v757_v59 = vld [vmem:[%s2481_s2 + $0x540] sm:$0xff]  ;;  %v772_v61 = vld [vmem:[%s2481_s2 + $0x5b8] sm:$0xff] }
  0xf2   :  { %1303 = vmatprep.subr.mxu0 %v674_v0  ;;  %1338 = vmatprep.subr.mxu1 %v706_v1  ;;  %v724_v62 = vld [vmem:[%s2481_s2 + $0x438] sm:$0xff]  ;;  %v739_v0 = vld [vmem:[%s2481_s2 + $0x4b0] sm:$0xff] }
  0xf3   :  { %1304 = vmatpush3.msra.mxu0 %v658_v2  ;;  %1339 = vmatpush3.msra.mxu1 %v690_v4  ;;  %v371_v15 = vpop.f32.mrf.mxu0  ;;  %v756_v63 = vld [vmem:[%s2481_s2 + $0x538] sm:$0xff]  ;;  %v771_v1 = vld [vmem:[%s2481_s2 + $0x5b0] sm:$0xff] }
  0xf4   :  { %1305 = vmatprep.subr.mxu0 %v673_v5  ;;  %1340 = vmatprep.subr.mxu1 %v705_v6  ;;  %v723_v2 = vld [vmem:[%s2481_s2 + $0x430] sm:$0xff]  ;;  %v738_v5 = vld [vmem:[%s2481_s2 + $0x4a8] sm:$0xff] }
  0xf5   :  { %1306 = vmatpush3.msra.mxu0 %v657_v7  ;;  %1341 = vmatpush3.msra.mxu1 %v689_v8  ;;  %v442_v18 = vpop.f32.mrf.mxu1  ;;  %v373_v23 = vpop.f32.mrf.mxu0  ;;  %v755_v4 = vld [vmem:[%s2481_s2 + $0x530] sm:$0xff]  ;;  %v770_v6 = vld [vmem:[%s2481_s2 + $0x5a8] sm:$0xff] }
  0xf6   :  { %1307 = vmatprep.subr.mxu0 %v672_v9  ;;  %1342 = vmatprep.subr.mxu1 %v704_v10  ;;  %v722_v7 = vld [vmem:[%s2481_s2 + $0x428] sm:$0xff]  ;;  %v737_v9 = vld [vmem:[%s2481_s2 + $0x4a0] sm:$0xff] }
  0xf7   :  { %1308 = vmatpush3.msra.mxu0 %v656_v11  ;;  %1343 = vmatpush3.msra.mxu1 %v688_v12  ;;  %v444_v3 = vpop.f32.mrf.mxu1  ;;  %v754_v8 = vld [vmem:[%s2481_s2 + $0x528] sm:$0xff]  ;;  %v769_v10 = vld [vmem:[%s2481_s2 + $0x5a0] sm:$0xff] }
  0xf8   :  { %1309 = vmatprep.subr.mxu0 %v671_v13  ;;  %1344 = vmatprep.subr.mxu1 %v703_v14  ;;  %v721_v11 = vld [vmem:[%s2481_s2 + $0x420] sm:$0xff]  ;;  %v736_v13 = vld [vmem:[%s2481_s2 + $0x498] sm:$0xff] }
  0xf9   :  { %1310 = vmatpush3.msra.mxu0 %v655_v16  ;;  %1345 = vmatpush3.msra.mxu1 %v687_v17  ;;  %v753_v12 = vld [vmem:[%s2481_s2 + $0x520] sm:$0xff]  ;;  %v768_v14 = vld [vmem:[%s2481_s2 + $0x598] sm:$0xff] }
  0xfa   :  { %1311 = vmatprep.subr.mxu0 %v670_v19  ;;  %1346 = vmatprep.subr.mxu1 %v702_v20  ;;  %v752_v16 = vld [vmem:[%s2481_s2 + $0x518] sm:$0xff]  ;;  %v767_v19 = vld [vmem:[%s2481_s2 + $0x590] sm:$0xff] }
  0xfb   :  { %1312 = vmatpush3.msra.mxu0 %v654_v21  ;;  %1347 = vmatpush3.msra.mxu1 %v686_v22  ;;  %v719_v20 = vld [vmem:[%s2481_s2 + $0x410] sm:$0xff] }
  0xfc   :  { %1313 = vmatprep.subr.mxu0 %v669_v24  ;;  %985 = vmatprep.mubr.f32.mxu0 %v373_v23  ;;  %v751_v21 = vld [vmem:[%s2481_s2 + $0x510] sm:$0xff]  ;;  %v734_v23 = vld [vmem:[%s2481_s2 + $0x488] sm:$0xff] }
  0xfd   :  { %1348 = vmatprep.subr.mxu1 %v701_v25  ;;  %1314 = vmatpush3.msra.mxu0 %v653_v26  ;;  %v766_v24 = vld [vmem:[%s2481_s2 + $0x588] sm:$0xff] }
  0xfe   :  { %1349 = vmatpush3.msra.mxu1 %v685_v27  ;;  %1055 = vmatprep.mubr.f32.mxu1 %v444_v3  ;;  %v718_v26 = vld [vmem:[%s2481_s2 + $0x408] sm:$0xff]  ;;  %v733_v27 = vld [vmem:[%s2481_s2 + $0x480] sm:$0xff] }
  0xff   :  { %986 = vmatmul.mubr.f32.vlgmr.msra.gmra.mxu0 %v371_v15  ;;  %1056 = vmatmul.mubr.f32.vlgmr.msra.gmra.mxu1 %v442_v18  ;;  %v720_v15 = vld [vmem:[%s2481_s2 + $0x418] sm:$0xff]  ;;  %v735_v18 = vld [vmem:[%s2481_s2 + $0x490] sm:$0xff]  ;;  %v750_v3 = vld [vmem:[%s2481_s2 + $0x508] sm:$0xff] }
 0x100   :  { %1353 = vmatprep.subr.mxu0 %v748_v28  ;;  %1388 = vmatprep.subr.mxu1 %v780_v29  ;;  %v765_v28 = vld [vmem:[%s2481_s2 + $0x580] sm:$0xff] }
 0x101   :  { %1354 = vmatpush3.msra.mxu0 %v732_v49  ;;  %1389 = vmatpush3.msra.mxu1 %v764_v30  ;;  %v717_v29 = vld [vmem:[%s2481_s2 + $0x400] sm:$0xff] }
 0x102   :  { %1355 = vmatprep.subr.mxu0 %v747_v31  ;;  %1390 = vmatprep.subr.mxu1 %v779_v32  ;;  %v749_v30 = vld [vmem:[%s2481_s2 + $0x500] sm:$0xff] }
 0x103   :  { %1356 = vmatpush3.msra.mxu0 %v731_v33  ;;  %1391 = vmatpush3.msra.mxu1 %v763_v34 }
 0x104   :  { %1357 = vmatprep.subr.mxu0 %v746_v35  ;;  %1392 = vmatprep.subr.mxu1 %v778_v36 }
 0x105   :  { %1358 = vmatpush3.msra.mxu0 %v730_v37  ;;  %1393 = vmatpush3.msra.mxu1 %v762_v38 }
 0x106   :  { %1359 = vmatprep.subr.mxu0 %v745_v39  ;;  %1394 = vmatprep.subr.mxu1 %v777_v40 }
 0x107   :  { %1360 = vmatpush3.msra.mxu0 %v729_v41  ;;  %1395 = vmatpush3.msra.mxu1 %v761_v42 }
 0x108   :  { %1361 = vmatprep.subr.mxu0 %v744_v43  ;;  %1396 = vmatprep.subr.mxu1 %v776_v44 }
 0x109   :  { %1362 = vmatpush3.msra.mxu0 %v728_v45  ;;  %1397 = vmatpush3.msra.mxu1 %v760_v46 }
 0x10a   :  { %1363 = vmatprep.subr.mxu0 %v743_v47  ;;  %1398 = vmatprep.subr.mxu1 %v775_v48 }
 0x10b   :  { %1364 = vmatpush3.msra.mxu0 %v727_v50  ;;  %1399 = vmatpush3.msra.mxu1 %v759_v51 }
 0x10c   :  { %1365 = vmatprep.subr.mxu0 %v742_v52  ;;  %1400 = vmatprep.subr.mxu1 %v774_v53  ;;  %v513_v17 = vpop.f32.mrf.mxu0 }
 0x10d   :  { %1366 = vmatpush3.msra.mxu0 %v726_v54  ;;  %1401 = vmatpush3.msra.mxu1 %v758_v55 }
 0x10e   :  { %1367 = vmatprep.subr.mxu0 %v741_v56  ;;  %1402 = vmatprep.subr.mxu1 %v773_v57  ;;  %v515_v25 = vpop.f32.mrf.mxu0 }
 0x10f   :  { %1368 = vmatpush3.msra.mxu0 %v725_v58  ;;  %1403 = vmatpush3.msra.mxu1 %v757_v59  ;;  %v584_v22 = vpop.f32.mrf.mxu1 }
 0x110   :  { %1369 = vmatprep.subr.mxu0 %v740_v60  ;;  %1404 = vmatprep.subr.mxu1 %v772_v61 }
 0x111   :  { %1370 = vmatpush3.msra.mxu0 %v724_v62  ;;  %1405 = vmatpush3.msra.mxu1 %v756_v63  ;;  %v586_v49 = vpop.f32.mrf.mxu1 }
 0x112   :  { %1371 = vmatprep.subr.mxu0 %v739_v0  ;;  %1406 = vmatprep.subr.mxu1 %v771_v1 }
 0x113   :  { %1372 = vmatpush3.msra.mxu0 %v723_v2  ;;  %1407 = vmatpush3.msra.mxu1 %v755_v4 }
 0x114   :  { %1373 = vmatprep.subr.mxu0 %v738_v5  ;;  %1408 = vmatprep.subr.mxu1 %v770_v6 }
 0x115   :  { %1374 = vmatpush3.msra.mxu0 %v722_v7  ;;  %1409 = vmatpush3.msra.mxu1 %v754_v8 }
 0x116   :  { %1375 = vmatprep.subr.mxu0 %v737_v9  ;;  %1410 = vmatprep.subr.mxu1 %v769_v10 }
 0x117   :  { %1376 = vmatpush3.msra.mxu0 %v721_v11  ;;  %1411 = vmatpush3.msra.mxu1 %v753_v12 }
 0x118   :  { %1377 = vmatprep.subr.mxu0 %v736_v13  ;;  %1412 = vmatprep.subr.mxu1 %v768_v14 }
 0x119   :  { %1378 = vmatpush3.msra.mxu0 %v720_v15  ;;  %1413 = vmatpush3.msra.mxu1 %v752_v16 }
 0x11a   :  { %1379 = vmatprep.subr.mxu0 %v735_v18  ;;  %1414 = vmatprep.subr.mxu1 %v767_v19 }
 0x11b   :  { %1380 = vmatpush3.msra.mxu0 %v719_v20  ;;  %1415 = vmatpush3.msra.mxu1 %v751_v21 }
 0x11c   :  { %1381 = vmatprep.subr.mxu0 %v734_v23  ;;  %1416 = vmatprep.subr.mxu1 %v766_v24 }
 0x11d   :  { %1382 = vmatpush3.msra.mxu0 %v718_v26  ;;  %1125 = vmatprep.mubr.f32.mxu0 %v515_v25 }
 0x11e   :  { %1417 = vmatpush3.msra.mxu1 %v750_v3  ;;  %1383 = vmatprep.subr.mxu0 %v733_v27 }
 0x11f   :  { %1418 = vmatprep.subr.mxu1 %v765_v28  ;;  %1384 = vmatpush3.msra.mxu0 %v717_v29 }
 0x120   :  { %1419 = vmatpush3.msra.mxu1 %v749_v30  ;;  %1195 = vmatprep.mubr.f32.mxu1 %v586_v49 }
 0x121   :  { %1126 = vmatmul.mubr.f32.vlgmr.msra.gmra.mxu0 %v513_v17  ;;  %1196 = vmatmul.mubr.f32.vlgmr.msra.gmra.mxu1 %v584_v22 }
 0x19e   :  { %v1245_v31 = vpop.f32.mrf.mxu0  ;;  %v1280_v32 = vpop.f32.mrf.mxu1 }
 0x1a0   :  { %v1246_v33 = vpop.f32.mrf.mxu0  ;;  %v1281_v35 = vpop.f32.mrf.mxu1 }
 0x1a1   :  { %v1247_v37 = vadd.f32 %v1246_v33, %v1245_v31  ;;  %v1282_v38 = vadd.f32 %v1281_v35, %v1280_v32 }
 0x1a3   :  { %v918_v41 = vadd.f32 %v1282_v38, %v1247_v37 }
 0x1bf   :  { %v1315_v34 = vpop.f32.mrf.mxu0  ;;  %v1350_v39 = vpop.f32.mrf.mxu1 }
 0x1c1   :  { %v1316_v36 = vpop.f32.mrf.mxu0  ;;  %v1351_v42 = vpop.f32.mrf.mxu1 }
 0x1c2   :  { %v1317_v40 = vadd.f32 %v1316_v36, %v1315_v34  ;;  %v1352_v46 = vadd.f32 %v1351_v42, %v1350_v39 }
 0x1c4   :  { %v988_v43 = vadd.f32 %v1317_v40, %v918_v41 }
 0x1c6   :  { %v1058_v50 = vadd.f32 %v1352_v46, %v988_v43 }
 0x1e1   :  { %v1385_v44 = vpop.f32.mrf.mxu0  ;;  %v1420_v45 = vpop.f32.mrf.mxu1 }
 0x1e3   :  { %v1386_v47 = vpop.f32.mrf.mxu0  ;;  %v1421_v48 = vpop.f32.mrf.mxu1 }
 0x1e4   :  { %v1387_v51 = vadd.f32 %v1386_v47, %v1385_v44  ;;  %v1422_v53 = vadd.f32 %v1421_v48, %v1420_v45 }
 0x1e6   :  { %v1128_v52 = vadd.f32 %v1387_v51, %v1058_v50 }
 0x1e8   :  { %v1198_v54 = vadd.f32 %v1422_v53, %v1128_v52 }
 0x1ea   :  { %1202 = vst.msk [vmem:[%s2482_s3] sm:$0x3] %vm1201_vm1, %v1198_v54 }

</bundles_post_ra>
